<compile_context>
chip_gen: v6e
topology: v6e:2x2x1
jax: 0.10.0
libtpu: 0.0.40
codegen_flags: <defaults>
</compile_context>

<pallas_src>
import functools

import jax
import jax.numpy as jnp
from jax.experimental import pallas as pl
from jax.experimental.pallas import tpu as pltpu


def fused_kernel(x_ref, cw_ref, cb_ref, w1c_ref, b1_ref, w2_ref, b2_ref,
                 o_ref, xp_ref, *, B, L, K, H, N1, pad):
    """Fused backbone (x3 channels) + FCN.

    x_ref  : (B, 3, L)      input in torch NCL layout
    cw_ref : (K, H)         backbone Conv1d weights (tap x out-channel)
    cb_ref : (1, H)         backbone Conv1d bias
    w1c_ref: (3, H, N1)     FC1 weights, rows pre-permuted to c-major order
    b1_ref : (1, N1)        FC1 bias
    w2_ref : (N1, 1)        FC2 weights
    b2_ref : (1, 1)         FC2 bias
    o_ref  : (B, 1)         output
    xp_ref : (B, L+2*pad)   VMEM scratch for in-kernel "same"-conv padding
    """
    cw = cw_ref[...]                                     # (K, H)
    cb = cb_ref[...]                                     # (1, H)
    inv_l = 1.0 / L

    # Zero the padded scratch once; only the middle [pad, pad+L) region is
    # rewritten per channel, the halo columns stay zero.
    xp_ref[...] = jnp.zeros((B, L + 2 * pad), jnp.float32)

    h1 = jnp.zeros((B, N1), jnp.float32)                 # FC1 pre-activation

    for c in range(3):                                   # static channel unroll
        # ---- backbone: Conv1d(1,H,K,pad="same") + ReLU + mean over L ----
        xp_ref[:, pad:pad + L] = x_ref[:, c, :]          # in-kernel pad/split
        xp = xp_ref[...]                                 # (B, L+2*pad)

        acc = jnp.zeros((B, L, H), jnp.float32)
        for j in range(K):                               # tiny static tap loop
            xs = xp[:, j:j + L]                          # (B, L) shifted window
            acc = acc + xs[:, :, None] * cw[j:j + 1, :][None, :, :]
        acc = jnp.maximum(acc + cb[None, :, :], 0.0)     # bias + ReLU
        feat = jnp.sum(acc, axis=1) * inv_l              # mean pool -> (B, H)

        # ---- FC1 accumulated per channel (c-major weights => the h*3+c
        #      flatten interleave never has to be materialized) ----
        h1 = h1 + jnp.dot(feat, w1c_ref[c],
                          preferred_element_type=jnp.float32)

    h1 = jnp.maximum(h1 + b1_ref[...], 0.0)              # FC1 bias + ReLU
    # (B, 1) final store is a single tiny masked vst; padding it to 128 lanes
    # would only trade it for an extra XLA slice outside the kernel.
    o_ref[...] = jnp.dot(h1, w2_ref[...],
                         preferred_element_type=jnp.float32) + b2_ref[...]


def multichannel_forward(x, params):
    """x: (B, 3, L) float32 -> y: (B, 1) float32."""
    B, C, L = x.shape
    assert C == 3
    conv_w, conv_b = params["conv_w"], params["conv_b"]
    w1, b1, w2, b2 = params["w1"], params["b1"], params["w2"], params["b2"]
    K, H = conv_w.shape
    N1 = w1.shape[1]
    pad = (K - 1) // 2

    # One-time weight re-layout: FC1 rows go from torch's flatten order
    # (row = h*3 + c) to c-major (3, H, N1) so per-channel pooled features can
    # be consumed contiguously inside the kernel.
    w1c = jnp.transpose(jnp.reshape(w1, (H, 3, N1)), (1, 0, 2))

    kernel = functools.partial(fused_kernel,
                               B=B, L=L, K=K, H=H, N1=N1, pad=pad)
    return pl.pallas_call(
        kernel,
        out_shape=jax.ShapeDtypeStruct((B, 1), jnp.float32),
        in_specs=[pl.BlockSpec(memory_space=pltpu.MemorySpace.VMEM)] * 7,
        out_specs=pl.BlockSpec(memory_space=pltpu.MemorySpace.VMEM),
        scratch_shapes=[pltpu.VMEM((B, L + 2 * pad), jnp.float32)],
    )(x.astype(jnp.float32), conv_w, conv_b, w1c, b1, w2, b2)


def reference_forward(x, params):
    """Pure-JAX reference of the same forward (for correctness check)."""
    conv_w, conv_b = params["conv_w"], params["conv_b"]
    w1, b1, w2, b2 = params["w1"], params["b1"], params["w2"], params["b2"]
    K, H = conv_w.shape
    pad = (K - 1) // 2
    B, C, L = x.shape
    outs = []
    for c in range(3):
        xp = jnp.pad(x[:, c, :], ((0, 0), (pad, pad)))
        cols = jnp.stack([xp[:, j:j + L] for j in range(K)], axis=-1)  # (B,L,K)
        conv = jnp.einsum("blk,kh->blh", cols, conv_w) + conv_b[0][None, None, :]
        conv = jnp.maximum(conv, 0.0)
        outs.append(conv.mean(axis=1))                                 # (B,H)
    feats = jnp.stack(outs, axis=-1)                                   # (B,H,3)
    x_flat = feats.reshape(B, H * 3)                                   # h*3+c
    h = jnp.maximum(x_flat @ w1 + b1, 0.0)
    return h @ w2 + b2


if __name__ == "__main__":
    B, C, L = 4, 3, 16
    hidden_dim = 32          # output width of the injected backbone `model`
    hidden1 = 32             # parameters['hidden1'], lin_layers == 2
    K = 3                    # backbone conv kernel width

    key = jax.random.PRNGKey(0)
    ks = jax.random.split(key, 8)
    x = jax.random.normal(ks[0], (B, C, L), jnp.float32)

    params = {
        "conv_w": jax.random.normal(ks[1], (K, hidden_dim), jnp.float32)
                  / jnp.sqrt(float(K)),
        "conv_b": jax.random.normal(ks[2], (1, hidden_dim), jnp.float32) * 0.1,
        "w1": jax.random.normal(ks[3], (hidden_dim * 3, hidden1), jnp.float32)
              / jnp.sqrt(float(hidden_dim * 3)),
        "b1": jax.random.normal(ks[4], (1, hidden1), jnp.float32) * 0.1,
        "w2": jax.random.normal(ks[5], (hidden1, 1), jnp.float32)
              / jnp.sqrt(float(hidden1)),
        "b2": jax.random.normal(ks[6], (1, 1), jnp.float32) * 0.1,
    }

    fwd = jax.jit(multichannel_forward)
    y = jax.block_until_ready(fwd(x, params))
    y_ref = reference_forward(x, params)

    assert y.shape == (B, 1), y.shape
    assert jnp.allclose(y, y_ref, rtol=1e-4, atol=1e-4), (y, y_ref)
    print("KERNEL_OK")
</pallas_src>

<mosaic_0001>
module attributes {stable_mosaic.version = 11 : i64} {
  func.func @fused_kernel(%arg0: memref<4x3x16xf32, #tpu.memory_space<vmem>>, %arg1: memref<3x32xf32, #tpu.memory_space<vmem>>, %arg2: memref<1x32xf32, #tpu.memory_space<vmem>>, %arg3: memref<3x32x32xf32, #tpu.memory_space<vmem>>, %arg4: memref<1x32xf32, #tpu.memory_space<vmem>>, %arg5: memref<32x1xf32, #tpu.memory_space<vmem>>, %arg6: memref<1x1xf32, #tpu.memory_space<vmem>>, %arg7: memref<4x1xf32, #tpu.memory_space<vmem>>, %arg8: memref<4x18xf32, #tpu.memory_space<vmem>>) attributes {dimension_semantics = [], scalar_prefetch = 0 : i64, scratch_operands = 1 : i64, tpu.core_type = #tpu.core_type<tc>} {
    %c0 = arith.constant 0 : index
    %c0_0 = arith.constant 0 : index
    %0 = vector.load %arg1[%c0, %c0_0] : memref<3x32xf32, #tpu.memory_space<vmem>>, vector<3x32xf32>
    %c0_1 = arith.constant 0 : index
    %c0_2 = arith.constant 0 : index
    %1 = vector.load %arg2[%c0_1, %c0_2] : memref<1x32xf32, #tpu.memory_space<vmem>>, vector<1x32xf32>
    %cst = arith.constant 0.000000e+00 : f32
    %2 = vector.broadcast %cst : f32 to vector<4x18xf32>
    %c0_3 = arith.constant 0 : index
    %c0_4 = arith.constant 0 : index
    %3 = vector.load %arg8[%c0_3, %c0_4] : memref<4x18xf32, #tpu.memory_space<vmem>>, vector<4x18xf32>
    tpu.vector_store %arg8[%c0_3, %c0_4], %2 {strides = array<i32>} : memref<4x18xf32, #tpu.memory_space<vmem>>, vector<4x18xf32>,
    %cst_5 = arith.constant 0.000000e+00 : f32
    %4 = vector.broadcast %cst_5 : f32 to vector<4x32xf32>
    %c0_6 = arith.constant 0 : index
    %c0_7 = arith.constant 0 : index
    %c0_8 = arith.constant 0 : index
    %5 = vector.load %arg0[%c0_6, %c0_7, %c0_8] : memref<4x3x16xf32, #tpu.memory_space<vmem>>, vector<4x1x16xf32>
    %6 = vector.shape_cast %5 : vector<4x1x16xf32> to vector<4x16xf32>
    %c0_9 = arith.constant 0 : index
    %c1 = arith.constant 1 : index
    %7 = vector.load %arg8[%c0_9, %c1] : memref<4x18xf32, #tpu.memory_space<vmem>>, vector<4x16xf32>
    tpu.vector_store %arg8[%c0_9, %c1], %6 {strides = array<i32>} : memref<4x18xf32, #tpu.memory_space<vmem>>, vector<4x16xf32>,
    %c0_10 = arith.constant 0 : index
    %c0_11 = arith.constant 0 : index
    %8 = vector.load %arg8[%c0_10, %c0_11] : memref<4x18xf32, #tpu.memory_space<vmem>>, vector<4x18xf32>
    %cst_12 = arith.constant 0.000000e+00 : f32
    %9 = vector.broadcast %cst_12 : f32 to vector<4x16x32xf32>
    %10 = vector.extract_strided_slice %8 {offsets = [0, 0], sizes = [4, 16], strides = [1, 1]} : vector<4x18xf32> to vector<4x16xf32>
    %11 = vector.shape_cast %10 : vector<4x16xf32> to vector<4x16x1xf32>
    %12 = vector.extract_strided_slice %0 {offsets = [0, 0], sizes = [1, 32], strides = [1, 1]} : vector<3x32xf32> to vector<1x32xf32>
    %13 = vector.shape_cast %12 : vector<1x32xf32> to vector<1x1x32xf32>
    %14 = vector.broadcast %11 : vector<4x16x1xf32> to vector<4x16x32xf32>
    %15 = vector.broadcast %13 : vector<1x1x32xf32> to vector<4x16x32xf32>
    %16 = arith.mulf %14, %15 : vector<4x16x32xf32>
    %17 = arith.addf %9, %16 : vector<4x16x32xf32>
    %18 = vector.extract_strided_slice %8 {offsets = [0, 1], sizes = [4, 16], strides = [1, 1]} : vector<4x18xf32> to vector<4x16xf32>
    %19 = vector.shape_cast %18 : vector<4x16xf32> to vector<4x16x1xf32>
    %20 = vector.extract_strided_slice %0 {offsets = [1, 0], sizes = [1, 32], strides = [1, 1]} : vector<3x32xf32> to vector<1x32xf32>
    %21 = vector.shape_cast %20 : vector<1x32xf32> to vector<1x1x32xf32>
    %22 = vector.broadcast %19 : vector<4x16x1xf32> to vector<4x16x32xf32>
    %23 = vector.broadcast %21 : vector<1x1x32xf32> to vector<4x16x32xf32>
    %24 = arith.mulf %22, %23 : vector<4x16x32xf32>
    %25 = arith.addf %17, %24 : vector<4x16x32xf32>
    %26 = vector.extract_strided_slice %8 {offsets = [0, 2], sizes = [4, 16], strides = [1, 1]} : vector<4x18xf32> to vector<4x16xf32>
    %27 = vector.shape_cast %26 : vector<4x16xf32> to vector<4x16x1xf32>
    %28 = vector.extract_strided_slice %0 {offsets = [2, 0], sizes = [1, 32], strides = [1, 1]} : vector<3x32xf32> to vector<1x32xf32>
    %29 = vector.shape_cast %28 : vector<1x32xf32> to vector<1x1x32xf32>
    %30 = vector.broadcast %27 : vector<4x16x1xf32> to vector<4x16x32xf32>
    %31 = vector.broadcast %29 : vector<1x1x32xf32> to vector<4x16x32xf32>
    %32 = arith.mulf %30, %31 : vector<4x16x32xf32>
    %33 = arith.addf %25, %32 : vector<4x16x32xf32>
    %34 = vector.shape_cast %1 : vector<1x32xf32> to vector<1x1x32xf32>
    %35 = vector.broadcast %34 : vector<1x1x32xf32> to vector<4x16x32xf32>
    %36 = arith.addf %33, %35 : vector<4x16x32xf32>
    %cst_13 = arith.constant 0.000000e+00 : f32
    %37 = vector.broadcast %cst_13 : f32 to vector<4x16x32xf32>
    %38 = arith.maximumf %36, %37 : vector<4x16x32xf32>
    %cst_14 = arith.constant dense<0.000000e+00> : vector<4x32xf32>
    %39 = vector.multi_reduction <add>, %38, %cst_14 [1] : vector<4x16x32xf32> to vector<4x32xf32>
    %cst_15 = arith.constant 6.250000e-02 : f32
    %40 = vector.broadcast %cst_15 : f32 to vector<4x32xf32>
    %41 = arith.mulf %39, %40 : vector<4x32xf32>
    %c0_16 = arith.constant 0 : index
    %c0_17 = arith.constant 0 : index
    %c0_18 = arith.constant 0 : index
    %42 = vector.load %arg3[%c0_16, %c0_17, %c0_18] : memref<3x32x32xf32, #tpu.memory_space<vmem>>, vector<1x32x32xf32>
    %43 = vector.shape_cast %42 : vector<1x32x32xf32> to vector<32x32xf32>
    %cst_19 = arith.constant dense<0.000000e+00> : vector<4x32xf32>
    %44 = tpu.matmul %41, %43, %cst_19 {dimension_numbers = #tpu.dot_dimension_numbers<[1], [0], [0], [1], [0, 0, 1, 1], [], []>} : vector<4x32xf32>, vector<32x32xf32>, vector<4x32xf32> -> vector<4x32xf32>
    %45 = arith.addf %4, %44 : vector<4x32xf32>
    %c0_20 = arith.constant 0 : index
    %c1_21 = arith.constant 1 : index
    %c0_22 = arith.constant 0 : index
    %46 = vector.load %arg0[%c0_20, %c1_21, %c0_22] : memref<4x3x16xf32, #tpu.memory_space<vmem>>, vector<4x1x16xf32>
    %47 = vector.shape_cast %46 : vector<4x1x16xf32> to vector<4x16xf32>
    %c0_23 = arith.constant 0 : index
    %c1_24 = arith.constant 1 : index
    %48 = vector.load %arg8[%c0_23, %c1_24] : memref<4x18xf32, #tpu.memory_space<vmem>>, vector<4x16xf32>
    tpu.vector_store %arg8[%c0_23, %c1_24], %47 {strides = array<i32>} : memref<4x18xf32, #tpu.memory_space<vmem>>, vector<4x16xf32>,
    %c0_25 = arith.constant 0 : index
    %c0_26 = arith.constant 0 : index
    %49 = vector.load %arg8[%c0_25, %c0_26] : memref<4x18xf32, #tpu.memory_space<vmem>>, vector<4x18xf32>
    %cst_27 = arith.constant 0.000000e+00 : f32
    %50 = vector.broadcast %cst_27 : f32 to vector<4x16x32xf32>
    %51 = vector.extract_strided_slice %49 {offsets = [0, 0], sizes = [4, 16], strides = [1, 1]} : vector<4x18xf32> to vector<4x16xf32>
    %52 = vector.shape_cast %51 : vector<4x16xf32> to vector<4x16x1xf32>
    %53 = vector.extract_strided_slice %0 {offsets = [0, 0], sizes = [1, 32], strides = [1, 1]} : vector<3x32xf32> to vector<1x32xf32>
    %54 = vector.shape_cast %53 : vector<1x32xf32> to vector<1x1x32xf32>
    %55 = vector.broadcast %52 : vector<4x16x1xf32> to vector<4x16x32xf32>
    %56 = vector.broadcast %54 : vector<1x1x32xf32> to vector<4x16x32xf32>
    %57 = arith.mulf %55, %56 : vector<4x16x32xf32>
    %58 = arith.addf %50, %57 : vector<4x16x32xf32>
    %59 = vector.extract_strided_slice %49 {offsets = [0, 1], sizes = [4, 16], strides = [1, 1]} : vector<4x18xf32> to vector<4x16xf32>
    %60 = vector.shape_cast %59 : vector<4x16xf32> to vector<4x16x1xf32>
    %61 = vector.extract_strided_slice %0 {offsets = [1, 0], sizes = [1, 32], strides = [1, 1]} : vector<3x32xf32> to vector<1x32xf32>
    %62 = vector.shape_cast %61 : vector<1x32xf32> to vector<1x1x32xf32>
    %63 = vector.broadcast %60 : vector<4x16x1xf32> to vector<4x16x32xf32>
    %64 = vector.broadcast %62 : vector<1x1x32xf32> to vector<4x16x32xf32>
    %65 = arith.mulf %63, %64 : vector<4x16x32xf32>
    %66 = arith.addf %58, %65 : vector<4x16x32xf32>
    %67 = vector.extract_strided_slice %49 {offsets = [0, 2], sizes = [4, 16], strides = [1, 1]} : vector<4x18xf32> to vector<4x16xf32>
    %68 = vector.shape_cast %67 : vector<4x16xf32> to vector<4x16x1xf32>
    %69 = vector.extract_strided_slice %0 {offsets = [2, 0], sizes = [1, 32], strides = [1, 1]} : vector<3x32xf32> to vector<1x32xf32>
    %70 = vector.shape_cast %69 : vector<1x32xf32> to vector<1x1x32xf32>
    %71 = vector.broadcast %68 : vector<4x16x1xf32> to vector<4x16x32xf32>
    %72 = vector.broadcast %70 : vector<1x1x32xf32> to vector<4x16x32xf32>
    %73 = arith.mulf %71, %72 : vector<4x16x32xf32>
    %74 = arith.addf %66, %73 : vector<4x16x32xf32>
    %75 = vector.shape_cast %1 : vector<1x32xf32> to vector<1x1x32xf32>
    %76 = vector.broadcast %75 : vector<1x1x32xf32> to vector<4x16x32xf32>
    %77 = arith.addf %74, %76 : vector<4x16x32xf32>
    %cst_28 = arith.constant 0.000000e+00 : f32
    %78 = vector.broadcast %cst_28 : f32 to vector<4x16x32xf32>
    %79 = arith.maximumf %77, %78 : vector<4x16x32xf32>
    %cst_29 = arith.constant dense<0.000000e+00> : vector<4x32xf32>
    %80 = vector.multi_reduction <add>, %79, %cst_29 [1] : vector<4x16x32xf32> to vector<4x32xf32>
    %cst_30 = arith.constant 6.250000e-02 : f32
    %81 = vector.broadcast %cst_30 : f32 to vector<4x32xf32>
    %82 = arith.mulf %80, %81 : vector<4x32xf32>
    %c1_31 = arith.constant 1 : index
    %c0_32 = arith.constant 0 : index
    %c0_33 = arith.constant 0 : index
    %83 = vector.load %arg3[%c1_31, %c0_32, %c0_33] : memref<3x32x32xf32, #tpu.memory_space<vmem>>, vector<1x32x32xf32>
    %84 = vector.shape_cast %83 : vector<1x32x32xf32> to vector<32x32xf32>
    %cst_34 = arith.constant dense<0.000000e+00> : vector<4x32xf32>
    %85 = tpu.matmul %82, %84, %cst_34 {dimension_numbers = #tpu.dot_dimension_numbers<[1], [0], [0], [1], [0, 0, 1, 1], [], []>} : vector<4x32xf32>, vector<32x32xf32>, vector<4x32xf32> -> vector<4x32xf32>
    %86 = arith.addf %45, %85 : vector<4x32xf32>
    %c0_35 = arith.constant 0 : index
    %c2 = arith.constant 2 : index
    %c0_36 = arith.constant 0 : index
    %87 = vector.load %arg0[%c0_35, %c2, %c0_36] : memref<4x3x16xf32, #tpu.memory_space<vmem>>, vector<4x1x16xf32>
    %88 = vector.shape_cast %87 : vector<4x1x16xf32> to vector<4x16xf32>
    %c0_37 = arith.constant 0 : index
    %c1_38 = arith.constant 1 : index
    %89 = vector.load %arg8[%c0_37, %c1_38] : memref<4x18xf32, #tpu.memory_space<vmem>>, vector<4x16xf32>
    tpu.vector_store %arg8[%c0_37, %c1_38], %88 {strides = array<i32>} : memref<4x18xf32, #tpu.memory_space<vmem>>, vector<4x16xf32>,
    %c0_39 = arith.constant 0 : index
    %c0_40 = arith.constant 0 : index
    %90 = vector.load %arg8[%c0_39, %c0_40] : memref<4x18xf32, #tpu.memory_space<vmem>>, vector<4x18xf32>
    %cst_41 = arith.constant 0.000000e+00 : f32
    %91 = vector.broadcast %cst_41 : f32 to vector<4x16x32xf32>
    %92 = vector.extract_strided_slice %90 {offsets = [0, 0], sizes = [4, 16], strides = [1, 1]} : vector<4x18xf32> to vector<4x16xf32>
    %93 = vector.shape_cast %92 : vector<4x16xf32> to vector<4x16x1xf32>
    %94 = vector.extract_strided_slice %0 {offsets = [0, 0], sizes = [1, 32], strides = [1, 1]} : vector<3x32xf32> to vector<1x32xf32>
    %95 = vector.shape_cast %94 : vector<1x32xf32> to vector<1x1x32xf32>
    %96 = vector.broadcast %93 : vector<4x16x1xf32> to vector<4x16x32xf32>
    %97 = vector.broadcast %95 : vector<1x1x32xf32> to vector<4x16x32xf32>
    %98 = arith.mulf %96, %97 : vector<4x16x32xf32>
    %99 = arith.addf %91, %98 : vector<4x16x32xf32>
    %100 = vector.extract_strided_slice %90 {offsets = [0, 1], sizes = [4, 16], strides = [1, 1]} : vector<4x18xf32> to vector<4x16xf32>
    %101 = vector.shape_cast %100 : vector<4x16xf32> to vector<4x16x1xf32>
    %102 = vector.extract_strided_slice %0 {offsets = [1, 0], sizes = [1, 32], strides = [1, 1]} : vector<3x32xf32> to vector<1x32xf32>
    %103 = vector.shape_cast %102 : vector<1x32xf32> to vector<1x1x32xf32>
    %104 = vector.broadcast %101 : vector<4x16x1xf32> to vector<4x16x32xf32>
    %105 = vector.broadcast %103 : vector<1x1x32xf32> to vector<4x16x32xf32>
    %106 = arith.mulf %104, %105 : vector<4x16x32xf32>
    %107 = arith.addf %99, %106 : vector<4x16x32xf32>
    %108 = vector.extract_strided_slice %90 {offsets = [0, 2], sizes = [4, 16], strides = [1, 1]} : vector<4x18xf32> to vector<4x16xf32>
    %109 = vector.shape_cast %108 : vector<4x16xf32> to vector<4x16x1xf32>
    %110 = vector.extract_strided_slice %0 {offsets = [2, 0], sizes = [1, 32], strides = [1, 1]} : vector<3x32xf32> to vector<1x32xf32>
    %111 = vector.shape_cast %110 : vector<1x32xf32> to vector<1x1x32xf32>
    %112 = vector.broadcast %109 : vector<4x16x1xf32> to vector<4x16x32xf32>
    %113 = vector.broadcast %111 : vector<1x1x32xf32> to vector<4x16x32xf32>
    %114 = arith.mulf %112, %113 : vector<4x16x32xf32>
    %115 = arith.addf %107, %114 : vector<4x16x32xf32>
    %116 = vector.shape_cast %1 : vector<1x32xf32> to vector<1x1x32xf32>
    %117 = vector.broadcast %116 : vector<1x1x32xf32> to vector<4x16x32xf32>
    %118 = arith.addf %115, %117 : vector<4x16x32xf32>
    %cst_42 = arith.constant 0.000000e+00 : f32
    %119 = vector.broadcast %cst_42 : f32 to vector<4x16x32xf32>
    %120 = arith.maximumf %118, %119 : vector<4x16x32xf32>
    %cst_43 = arith.constant dense<0.000000e+00> : vector<4x32xf32>
    %121 = vector.multi_reduction <add>, %120, %cst_43 [1] : vector<4x16x32xf32> to vector<4x32xf32>
    %cst_44 = arith.constant 6.250000e-02 : f32
    %122 = vector.broadcast %cst_44 : f32 to vector<4x32xf32>
    %123 = arith.mulf %121, %122 : vector<4x32xf32>
    %c2_45 = arith.constant 2 : index
    %c0_46 = arith.constant 0 : index
    %c0_47 = arith.constant 0 : index
    %124 = vector.load %arg3[%c2_45, %c0_46, %c0_47] : memref<3x32x32xf32, #tpu.memory_space<vmem>>, vector<1x32x32xf32>
    %125 = vector.shape_cast %124 : vector<1x32x32xf32> to vector<32x32xf32>
    %cst_48 = arith.constant dense<0.000000e+00> : vector<4x32xf32>
    %126 = tpu.matmul %123, %125, %cst_48 {dimension_numbers = #tpu.dot_dimension_numbers<[1], [0], [0], [1], [0, 0, 1, 1], [], []>} : vector<4x32xf32>, vector<32x32xf32>, vector<4x32xf32> -> vector<4x32xf32>
    %127 = arith.addf %86, %126 : vector<4x32xf32>
    %c0_49 = arith.constant 0 : index
    %c0_50 = arith.constant 0 : index
    %128 = vector.load %arg4[%c0_49, %c0_50] : memref<1x32xf32, #tpu.memory_space<vmem>>, vector<1x32xf32>
    %129 = vector.broadcast %128 : vector<1x32xf32> to vector<4x32xf32>
    %130 = arith.addf %127, %129 : vector<4x32xf32>
    %cst_51 = arith.constant 0.000000e+00 : f32
    %131 = vector.broadcast %cst_51 : f32 to vector<4x32xf32>
    %132 = arith.maximumf %130, %131 : vector<4x32xf32>
    %c0_52 = arith.constant 0 : index
    %c0_53 = arith.constant 0 : index
    %133 = vector.load %arg5[%c0_52, %c0_53] : memref<32x1xf32, #tpu.memory_space<vmem>>, vector<32x1xf32>
    %cst_54 = arith.constant dense<0.000000e+00> : vector<4x1xf32>
    %134 = tpu.matmul %132, %133, %cst_54 {dimension_numbers = #tpu.dot_dimension_numbers<[1], [0], [0], [1], [0, 0, 1, 1], [], []>} : vector<4x32xf32>, vector<32x1xf32>, vector<4x1xf32> -> vector<4x1xf32>
    %c0_55 = arith.constant 0 : index
    %c0_56 = arith.constant 0 : index
    %135 = vector.load %arg6[%c0_55, %c0_56] : memref<1x1xf32, #tpu.memory_space<vmem>>, vector<1x1xf32>
    %136 = vector.broadcast %135 : vector<1x1xf32> to vector<4x1xf32>
    %137 = arith.addf %134, %136 : vector<4x1xf32>
    %c0_57 = arith.constant 0 : index
    %c0_58 = arith.constant 0 : index
    %138 = vector.load %arg7[%c0_57, %c0_58] : memref<4x1xf32, #tpu.memory_space<vmem>>, vector<4x1xf32>
    tpu.vector_store %arg7[%c0_57, %c0_58], %137 {strides = array<i32>} : memref<4x1xf32, #tpu.memory_space<vmem>>, vector<4x1xf32>,
    return
  }
}

</mosaic_0001>

<bundles_post_ra>
// kernel: multichannel_forward.1
= control target key start
LH: loop header
LB: loop body
LE: loop exit
PB: predicated region body
PF: predicated region fallthrough
CT: control target
= control target key end

     0   :  { %vm41_vm0 = vcmask 1041409   ;;  %vm44_vm1 = vcmask 1042434   ;;  %vm47_vm2 = vcmask 1043459   ;;  %vm30_vm3 = vcmask 142336   ;;  %s1182_s25 = smov 1   ;;  %s1537_s0 = inlined_call_operand.vmem [shape: f32[4,3,16], index: 0, kind: input, shape index: {}]   ;;  %s1538_s3 = inlined_call_operand.vmem [shape: f32[3,32,32], index: 3, kind: input, shape index: {}]   ;;  %s1539_s1 = inlined_call_operand.vmem [shape: f32[3,32], index: 1, kind: input, shape index: {}]   ;;  %s1540_s2 = inlined_call_operand.vmem [shape: f32[1,32], index: 2, kind: input, shape index: {}]   ;;  %s1541_s5 = inlined_call_operand.vmem [shape: f32[32,1], index: 5, kind: input, shape index: {}]   ;;  %s1542_s6 = inlined_call_operand.<no memory space> [shape: f32[1,1], index: 6, kind: input, shape index: {}]   ;;  %s1543_s4 = inlined_call_operand.vmem [shape: f32[1,32], index: 4, kind: input, shape index: {}]   ;;  %s1544_s7 = inlined_call_operand.vmem [shape: f32[4,1], index: 7, kind: output, shape index: {}]  }
   0x1   :  { %v32_v0 = vld [vmem:[%s1537_s0] sm:$0x1]  ;;  %v33_v1 = vld [vmem:[%s1537_s0 + $0x4] sm:$0x1]  ;;  %v34_v2 = vld [vmem:[%s1537_s0 + $0x8] sm:$0x1]  ;;  %v55_v31 = vlaneseq }
   0x2   :  { %v35_v3 = vld [vmem:[%s1537_s0 + $0xc] sm:$0x1]  ;;  %v40_v4 = vrot.slane %v33_v1, 7  ;;  %v43_v5 = vrot.slane %v34_v2, 6  ;;  %v290_v6 = vld [vmem:[%s1537_s0 + $0x1] sm:$0x1] }
   0x3   :  { %v46_v7 = vrot.slane %v35_v3, 5  ;;  %v291_v8 = vld [vmem:[%s1537_s0 + $0x5] sm:$0x1]  ;;  %v292_v9 = vld [vmem:[%s1537_s0 + $0x9] sm:$0x1]  ;;  %v1181_v15 = vmov 0.0  }
   0x4   :  { %v42_v10 = vsel %vm41_vm0, %v40_v4, %v32_v0  ;;  %v293_v11 = vld [vmem:[%s1537_s0 + $0xd] sm:$0x1]  ;;  %v298_v12 = vrot.slane %v291_v8, 7  ;;  %v300_v13 = vrot.slane %v292_v9, 6  ;;  %v684_v14 = vld [vmem:[%s1537_s0 + $0x2] sm:$0x1]  ;;  %1145 = vmatprep.subr.mxu1 %v1181_v15  ;;  %1134 = vmatprep.subr.mxu0 %v1181_v15 }
   0x5   :  { %31 = vst.msk [vmem:[#allocation2] sm:$0xf] %vm30_vm3, %v1181_v15  ;;  %v45_v16 = vsel %vm44_vm1, %v43_v5, %v42_v10  ;;  %v302_v17 = vrot.slane %v293_v11, 5  ;;  %v685_v18 = vld [vmem:[%s1537_s0 + $0x6] sm:$0x1]  ;;  %vm52_vm4 = vcmask 134152  }
   0x6   :  { %v686_v19 = vld [vmem:[%s1537_s0 + $0xa] sm:$0x1]  ;;  %v48_v20 = vsel %vm47_vm2, %v46_v7, %v45_v16  ;;  %v299_v21 = vsel %vm41_vm0, %v298_v12, %v290_v6  ;;  %v687_v22 = vld [vmem:[%s1537_s0 + $0xe] sm:$0x1]  ;;  %v692_v23 = vrot.slane %v685_v18, 7  ;;  %v56_v33 = vshrl.u32 %v55_v31, 7 }
   0x7   :  { %v694_v24 = vrot.slane %v686_v19, 6  ;;  %49 = vrot.lane.b32.xlu0 %v48_v20, %s1182_s25  ;;  %v301_v25 = vsel %vm44_vm1, %v300_v13, %v299_v21  ;;  %v696_v26 = vrot.slane %v687_v22, 5  ;;  %v289_v48 = vld [vmem:[%s1538_s3 + $0x18] sm:$0xff]  ;;  %v288_v49 = vld [vmem:[%s1538_s3 + $0x10] sm:$0xff]  ;;  %v287_v50 = vld [vmem:[%s1538_s3 + $0x8] sm:$0xff]  ;;  %vm1183_vm5 = vmmov 0  }
   0x8   :  { %v303_v27 = vsel %vm47_vm2, %v302_v17, %v301_v25  ;;  %v693_v28 = vsel %vm41_vm0, %v692_v23, %v684_v14  ;;  %v1274_v34 = vsub.s32 0, %v56_v33  ;;  %v1277_v38 = vsub.s32 1, %v56_v33  ;;  %1146 = vmatpush3.msra.mxu1 %v289_v48  ;;  %v286_v51 = vld [vmem:[%s1538_s3] sm:$0xff]  ;;  %1153 = vmatprep.mubr.msk.f32.mxu1 %vm1183_vm5, %v1181_v15  ;;  %v1103_v56 = vld [vmem:[%s1538_s3 + $0x38] sm:$0xff]  ;;  %v1102_v58 = vld [vmem:[%s1538_s3 + $0x30] sm:$0xff] }
   0x9   :  { %v695_v29 = vsel %vm44_vm1, %v694_v24, %v693_v28  ;;  %v1282_v42 = vsub.s32 2, %v56_v33  ;;  %v1285_v44 = vsub.s32 3, %v56_v33  ;;  %1147 = vmatprep.subr.mxu1 %v1181_v15  ;;  %1142 = vmatprep.mubr.msk.f32.mxu0 %vm1183_vm5, %v1181_v15  ;;  %v1101_v59 = vld [vmem:[%s1538_s3 + $0x28] sm:$0xff]  ;;  %v1100_v60 = vld [vmem:[%s1538_s3 + $0x20] sm:$0xff]  ;;  %vm245_vm6 = vcmask 261120  }
   0xa   :  { %v697_v30 = vsel %vm47_vm2, %v696_v26, %v695_v29  ;;  %1148 = vmatpush3.msra.mxu1 %v288_v49  ;;  %1135 = vmatpush3.msra.mxu0 %v1103_v56  ;;  %v28_v11 = vld [vmem:[%s1539_s1] sm:$0x7]  ;;  %vm1093_vm7 = vcmask 3072  }
   0xb   :  { %304 = vrot.lane.b32.xlu0 %v303_v27, %s1182_s25  ;;  %698 = vrot.lane.b32.xlu1 %v697_v30, %s1182_s25  ;;  %v1336_v14 = vrot.slane %v28_v11, %v1277_v38  ;;  %v1339_v16 = vrot.slane %v28_v11, %v1274_v34  ;;  %v1342_v19 = vrot.slane %v28_v11, %v1282_v42 }
   0xc   :  { %1149 = vmatprep.subr.mxu1 %v1181_v15  ;;  %1136 = vmatprep.subr.mxu0 %v1181_v15 }
   0xd   :  { %1150 = vmatpush3.msra.mxu1 %v287_v50  ;;  %1137 = vmatpush3.msra.mxu0 %v1102_v58 }
   0xe   :  { %1151 = vmatprep.subr.mxu1 %v1181_v15  ;;  %1138 = vmatprep.subr.mxu0 %v1181_v15 }
   0xf   :  { %1152 = vmatpush3.msra.mxu1 %v286_v51  ;;  %1139 = vmatpush3.msra.mxu0 %v1101_v59 }
  0x10   :  { %1167 = vmatprep.subr.mxu1 %v1181_v15  ;;  %1140 = vmatprep.subr.mxu0 %v1181_v15 }
  0x11   :  { %1141 = vmatpush3.msra.mxu0 %v1100_v60 }
  0x12   :  { %1156 = vmatprep.subr.mxu0 %v1181_v15 }
  0x79   :  { %v50_v32 = vpop.permute.xlu0 %49 }
  0x7a   :  { %53 = vst.msk [vmem:[#allocation2] sm:$0xf] %vm52_vm4, %v50_v32 }
  0x7d   :  { %v305_v35 = vpop.permute.xlu0 %304  ;;  %v699_v40 = vpop.permute.xlu1 %698 }
  0x81   :  { %v54_v36 = vld [vmem:[#allocation2] sm:$0xf] }
  0x82   :  { %v58_v37 = vrot.slane %v54_v36, %v1274_v34  ;;  %307 = vst.msk [vmem:[#allocation2] sm:$0xf] %vm52_vm4, %v305_v35  ;;  %v69_v39 = vrot.slane %v54_v36, %v1277_v38  ;;  %v80_v43 = vrot.slane %v54_v36, %v1282_v42  ;;  %v91_v45 = vrot.slane %v54_v36, %v1285_v44 }
  0x84   :  { %64 = vbcast.lane.b32.xlu0 %v58_v37, 264  ;;  %60 = vbcast.lane.b32.xlu1 %v58_v37, 256 }
  0x88   :  { %75 = vbcast.lane.b32.xlu0 %v69_v39, 264  ;;  %71 = vbcast.lane.b32.xlu1 %v69_v39, 256 }
  0x89   :  { %v308_v41 = vld [vmem:[#allocation2] sm:$0xf] }
  0x8a   :  { %701 = vst.msk [vmem:[#allocation2] sm:$0xf] %vm52_vm4, %v699_v40  ;;  %v312_v46 = vrot.slane %v308_v41, %v1274_v34  ;;  %v323_v47 = vrot.slane %v308_v41, %v1277_v38  ;;  %v334_v52 = vrot.slane %v308_v41, %v1282_v42  ;;  %v345_v53 = vrot.slane %v308_v41, %v1285_v44 }
  0x8c   :  { %125 = vbcast.lane.b32.xlu0 %v58_v37, 265  ;;  %121 = vbcast.lane.b32.xlu1 %v58_v37, 257 }
  0x90   :  { %133 = vbcast.lane.b32.xlu0 %v69_v39, 265  ;;  %129 = vbcast.lane.b32.xlu1 %v69_v39, 257 }
  0x91   :  { %v702_v54 = vld [vmem:[#allocation2] sm:$0xf] }
  0x92   :  { %v706_v55 = vrot.slane %v702_v54, %v1274_v34  ;;  %v717_v57 = vrot.slane %v702_v54, %v1277_v38  ;;  %v728_v61 = vrot.slane %v702_v54, %v1282_v42  ;;  %v739_v2 = vrot.slane %v702_v54, %v1285_v44  ;;  %v1357_v34 = vld [vmem:[%s1540_s2] ss:$0 sm:$0xff] }
  0x94   :  { %86 = vbcast.lane.b32.xlu0 %v80_v43, 264  ;;  %82 = vbcast.lane.b32.xlu1 %v80_v43, 256 }
  0x98   :  { %141 = vbcast.lane.b32.xlu0 %v80_v43, 265  ;;  %137 = vbcast.lane.b32.xlu1 %v80_v43, 257 }
  0x9c   :  { %97 = vbcast.lane.b32.xlu0 %v91_v45, 264  ;;  %93 = vbcast.lane.b32.xlu1 %v91_v45, 256 }
  0xa0   :  { %149 = vbcast.lane.b32.xlu0 %v91_v45, 265  ;;  %145 = vbcast.lane.b32.xlu1 %v91_v45, 257 }
  0xa4   :  { %177 = vbcast.lane.b32.xlu0 %v58_v37, 266  ;;  %173 = vbcast.lane.b32.xlu1 %v58_v37, 258 }
  0xa8   :  { %185 = vbcast.lane.b32.xlu0 %v69_v39, 266  ;;  %181 = vbcast.lane.b32.xlu1 %v69_v39, 258 }
  0xac   :  { %193 = vbcast.lane.b32.xlu0 %v80_v43, 266  ;;  %189 = vbcast.lane.b32.xlu1 %v80_v43, 258 }
  0xb0   :  { %201 = vbcast.lane.b32.xlu0 %v91_v45, 266  ;;  %197 = vbcast.lane.b32.xlu1 %v91_v45, 258 }
  0xb4   :  { %318 = vbcast.lane.b32.xlu0 %v312_v46, 264  ;;  %314 = vbcast.lane.b32.xlu1 %v312_v46, 256 }
  0xb8   :  { %329 = vbcast.lane.b32.xlu0 %v323_v47, 264  ;;  %325 = vbcast.lane.b32.xlu1 %v323_v47, 256 }
  0xbc   :  { %375 = vbcast.lane.b32.xlu0 %v312_v46, 265  ;;  %371 = vbcast.lane.b32.xlu1 %v312_v46, 257 }
  0xc0   :  { %383 = vbcast.lane.b32.xlu0 %v323_v47, 265  ;;  %379 = vbcast.lane.b32.xlu1 %v323_v47, 257 }
  0xc4   :  { %340 = vbcast.lane.b32.xlu0 %v334_v52, 264  ;;  %336 = vbcast.lane.b32.xlu1 %v334_v52, 256 }
  0xc8   :  { %391 = vbcast.lane.b32.xlu0 %v334_v52, 265  ;;  %387 = vbcast.lane.b32.xlu1 %v334_v52, 257 }
  0xcc   :  { %351 = vbcast.lane.b32.xlu0 %v345_v53, 264  ;;  %347 = vbcast.lane.b32.xlu1 %v345_v53, 256 }
  0xd0   :  { %399 = vbcast.lane.b32.xlu0 %v345_v53, 265  ;;  %395 = vbcast.lane.b32.xlu1 %v345_v53, 257 }
  0xd4   :  { %423 = vbcast.lane.b32.xlu0 %v312_v46, 266  ;;  %419 = vbcast.lane.b32.xlu1 %v312_v46, 258 }
  0xd8   :  { %431 = vbcast.lane.b32.xlu0 %v323_v47, 266  ;;  %427 = vbcast.lane.b32.xlu1 %v323_v47, 258 }
  0xdc   :  { %439 = vbcast.lane.b32.xlu0 %v334_v52, 266  ;;  %435 = vbcast.lane.b32.xlu1 %v334_v52, 258 }
  0xe0   :  { %447 = vbcast.lane.b32.xlu0 %v345_v53, 266  ;;  %443 = vbcast.lane.b32.xlu1 %v345_v53, 258 }
  0xe4   :  { %712 = vbcast.lane.b32.xlu0 %v706_v55, 264  ;;  %708 = vbcast.lane.b32.xlu1 %v706_v55, 256 }
  0xe8   :  { %723 = vbcast.lane.b32.xlu0 %v717_v57, 264  ;;  %719 = vbcast.lane.b32.xlu1 %v717_v57, 256 }
  0xec   :  { %769 = vbcast.lane.b32.xlu0 %v706_v55, 265  ;;  %765 = vbcast.lane.b32.xlu1 %v706_v55, 257 }
  0xf0   :  { %777 = vbcast.lane.b32.xlu0 %v717_v57, 265  ;;  %773 = vbcast.lane.b32.xlu1 %v717_v57, 257 }
  0xf4   :  { %734 = vbcast.lane.b32.xlu0 %v728_v61, 264  ;;  %730 = vbcast.lane.b32.xlu1 %v728_v61, 256 }
  0xf6   :  { %v61_v62 = vpop.permute.xlu1 %60  ;;  %v65_v63 = vpop.permute.xlu0 %64 }
  0xf7   :  { %v103_v22 = vmul.f32 %v1339_v16, %v61_v62  ;;  %v104_v23 = vmul.f32 %v1339_v16, %v65_v63 }
  0xf8   :  { %785 = vbcast.lane.b32.xlu0 %v728_v61, 265  ;;  %781 = vbcast.lane.b32.xlu1 %v728_v61, 257 }
  0xfa   :  { %v72_v0 = vpop.permute.xlu1 %71  ;;  %v76_v1 = vpop.permute.xlu0 %75 }
  0xfb   :  { %v105_v32 = vmul.f32 %v1339_v16, %v72_v0  ;;  %v106_v33 = vmul.f32 %v1339_v16, %v76_v1 }
  0xfc   :  { %745 = vbcast.lane.b32.xlu0 %v739_v2, 264  ;;  %741 = vbcast.lane.b32.xlu1 %v739_v2, 256 }
  0xfe   :  { %v122_v3 = vpop.permute.xlu1 %121  ;;  %v126_v4 = vpop.permute.xlu0 %125 }
  0xff   :  { %v155_v20 = vmul.f32 %v1336_v14, %v122_v3  ;;  %v156_v21 = vmul.f32 %v1336_v14, %v126_v4 }
 0x100   :  { %793 = vbcast.lane.b32.xlu0 %v739_v2, 265  ;;  %789 = vbcast.lane.b32.xlu1 %v739_v2, 257 }
 0x101   :  { %v163_v28 = vadd.f32 %v155_v20, %v103_v22  ;;  %v164_v29 = vadd.f32 %v156_v21, %v104_v23 }
 0x102   :  { %v130_v5 = vpop.permute.xlu1 %129  ;;  %v134_v6 = vpop.permute.xlu0 %133 }
 0x103   :  { %v157_v24 = vmul.f32 %v1336_v14, %v130_v5  ;;  %v158_v25 = vmul.f32 %v1336_v14, %v134_v6 }
 0x104   :  { %817 = vbcast.lane.b32.xlu0 %v706_v55, 266  ;;  %813 = vbcast.lane.b32.xlu1 %v706_v55, 258 }
 0x105   :  { %v165_v37 = vadd.f32 %v157_v24, %v105_v32  ;;  %v166_v38 = vadd.f32 %v158_v25, %v106_v33 }
 0x106   :  { %v83_v7 = vpop.permute.xlu1 %82  ;;  %v87_v8 = vpop.permute.xlu0 %86 }
 0x107   :  { %v107_v47 = vmul.f32 %v1339_v16, %v83_v7  ;;  %v108_v48 = vmul.f32 %v1339_v16, %v87_v8 }
 0x108   :  { %825 = vbcast.lane.b32.xlu0 %v717_v57, 266  ;;  %821 = vbcast.lane.b32.xlu1 %v717_v57, 258 }
 0x10a   :  { %v138_v9 = vpop.permute.xlu1 %137  ;;  %v142_v10 = vpop.permute.xlu0 %141 }
 0x10b   :  { %v159_v39 = vmul.f32 %v1336_v14, %v138_v9  ;;  %v160_v40 = vmul.f32 %v1336_v14, %v142_v10 }
 0x10c   :  { %833 = vbcast.lane.b32.xlu0 %v728_v61, 266  ;;  %829 = vbcast.lane.b32.xlu1 %v728_v61, 258 }
 0x10d   :  { %v167_v54 = vadd.f32 %v159_v39, %v107_v47  ;;  %v168_v55 = vadd.f32 %v160_v40, %v108_v48 }
 0x10e   :  { %v94_v12 = vpop.permute.xlu1 %93  ;;  %v98_v13 = vpop.permute.xlu0 %97 }
 0x10f   :  { %v109_v56 = vmul.f32 %v1339_v16, %v94_v12  ;;  %v110_v0 = vmul.f32 %v1339_v16, %v98_v13 }
 0x110   :  { %841 = vbcast.lane.b32.xlu0 %v739_v2, 266  ;;  %837 = vbcast.lane.b32.xlu1 %v739_v2, 258 }
 0x112   :  { %v146_v17 = vpop.permute.xlu1 %145  ;;  %v150_v18 = vpop.permute.xlu0 %149 }
 0x113   :  { %v161_v49 = vmul.f32 %v1336_v14, %v146_v17  ;;  %v162_v57 = vmul.f32 %v1336_v14, %v150_v18 }
 0x115   :  { %v169_v4 = vadd.f32 %v161_v49, %v109_v56  ;;  %v170_v7 = vadd.f32 %v162_v57, %v110_v0 }
 0x116   :  { %v174_v26 = vpop.permute.xlu1 %173  ;;  %v178_v27 = vpop.permute.xlu0 %177 }
 0x117   :  { %v207_v30 = vmul.f32 %v1342_v19, %v174_v26  ;;  %v208_v31 = vmul.f32 %v1342_v19, %v178_v27 }
 0x119   :  { %v215_v35 = vadd.f32 %v207_v30, %v163_v28  ;;  %v216_v36 = vadd.f32 %v208_v31, %v164_v29 }
 0x11a   :  { %v182_v41 = vpop.permute.xlu1 %181  ;;  %v186_v42 = vpop.permute.xlu0 %185 }
 0x11b   :  { %v229_v43 = vadd.f32 %v1357_v34, %v215_v35  ;;  %v230_v44 = vadd.f32 %v1357_v34, %v216_v36  ;;  %v209_v45 = vmul.f32 %v1342_v19, %v182_v41  ;;  %v210_v46 = vmul.f32 %v1342_v19, %v186_v42 }
 0x11d   :  { %v237_v50 = vmax.f32 %v229_v43, 0.0  ;;  %v238_v51 = vmax.f32 %v230_v44, 0.0  ;;  %v217_v52 = vadd.f32 %v209_v45, %v165_v37  ;;  %v218_v53 = vadd.f32 %v210_v46, %v166_v38 }
 0x11e   :  { %v190_v58 = vpop.permute.xlu1 %189  ;;  %v194_v59 = vpop.permute.xlu0 %193 }
 0x11f   :  { %v246_v60 = vsel %vm245_vm6, %v237_v50, 0.0  ;;  %v247_v61 = vsel %vm245_vm6, %v238_v51, 0.0  ;;  %v231_v62 = vadd.f32 %v1357_v34, %v217_v52  ;;  %v232_v63 = vadd.f32 %v1357_v34, %v218_v53 }
 0x120   :  { %v248_v1 = vadd.f32 %v247_v61, %v246_v60  ;;  %v211_v2 = vmul.f32 %v1342_v19, %v190_v58  ;;  %v212_v3 = vmul.f32 %v1342_v19, %v194_v59 }
 0x121   :  { %v239_v5 = vmax.f32 %v231_v62, 0.0  ;;  %v240_v6 = vmax.f32 %v232_v63, 0.0 }
 0x122   :  { %v249_v8 = vrot.slane %v248_v1, 4  ;;  %v219_v9 = vadd.f32 %v211_v2, %v167_v54  ;;  %v220_v10 = vadd.f32 %v212_v3, %v168_v55  ;;  %v198_v11 = vpop.permute.xlu1 %197  ;;  %v202_v12 = vpop.permute.xlu0 %201 }
 0x123   :  { %v255_v17 = vsel %vm245_vm6, %v239_v5, 0.0  ;;  %v256_v18 = vsel %vm245_vm6, %v240_v6, 0.0  ;;  %v213_v13 = vmul.f32 %v1342_v19, %v198_v11  ;;  %v214_v20 = vmul.f32 %v1342_v19, %v202_v12 }
 0x124   :  { %v250_v21 = vadd.f32 %v249_v8, %v248_v1  ;;  %v257_v22 = vadd.f32 %v256_v18, %v255_v17  ;;  %v233_v23 = vadd.f32 %v1357_v34, %v219_v9  ;;  %v234_v24 = vadd.f32 %v1357_v34, %v220_v10 }
 0x125   :  { %v221_v25 = vadd.f32 %v213_v13, %v169_v4  ;;  %v222_v26 = vadd.f32 %v214_v20, %v170_v7 }
 0x126   :  { %v258_v27 = vrot.slane %v257_v22, 4  ;;  %v241_v28 = vmax.f32 %v233_v23, 0.0  ;;  %v242_v29 = vmax.f32 %v234_v24, 0.0  ;;  %v315_v30 = vpop.permute.xlu1 %314  ;;  %v319_v31 = vpop.permute.xlu0 %318  ;;  %v251_v35 = vrot.slane %v250_v21, 2 }
 0x127   :  { %v235_v32 = vadd.f32 %v1357_v34, %v221_v25  ;;  %v236_v33 = vadd.f32 %v1357_v34, %v222_v26 }
 0x128   :  { %v259_v36 = vadd.f32 %v258_v27, %v257_v22  ;;  %v264_v37 = vsel %vm245_vm6, %v241_v28, 0.0  ;;  %v265_v38 = vsel %vm245_vm6, %v242_v29, 0.0  ;;  %v252_v48 = vadd.f32 %v251_v35, %v250_v21 }
 0x129   :  { %v266_v39 = vadd.f32 %v265_v38, %v264_v37  ;;  %v243_v40 = vmax.f32 %v235_v32, 0.0  ;;  %v244_v41 = vmax.f32 %v236_v33, 0.0  ;;  %v353_v27 = vmul.f32 %v315_v30, %v1339_v16 }
 0x12a   :  { %v260_v42 = vrot.slane %v259_v36, 2  ;;  %v326_v43 = vpop.permute.xlu1 %325  ;;  %v330_v44 = vpop.permute.xlu0 %329  ;;  %v253_v57 = vrot.slane %v252_v48, 1  ;;  %v354_v28 = vmul.f32 %v319_v31, %v1339_v16 }
 0x12b   :  { %v267_v45 = vrot.slane %v266_v39, 4  ;;  %v273_v46 = vsel %vm245_vm6, %v243_v40, 0.0  ;;  %v274_v47 = vsel %vm245_vm6, %v244_v41, 0.0  ;;  %v355_v40 = vmul.f32 %v326_v43, %v1339_v16 }
 0x12c   :  { %v261_v49 = vadd.f32 %v260_v42, %v259_v36  ;;  %v275_v50 = vadd.f32 %v274_v47, %v273_v46  ;;  %v254_v1 = vadd.f32 %v253_v57, %v252_v48  ;;  %v356_v41 = vmul.f32 %v330_v44, %v1339_v16 }
 0x12d   :  { %v268_v51 = vadd.f32 %v267_v45, %v266_v39 }
 0x12e   :  { %v262_v52 = vrot.slane %v261_v49, 1  ;;  %v276_v53 = vrot.slane %v275_v50, 4  ;;  %v372_v54 = vpop.permute.xlu1 %371  ;;  %v376_v55 = vpop.permute.xlu0 %375  ;;  %v282_v10 = vmul.f32 0.0625, %v254_v1 }
 0x12f   :  { %v269_v56 = vrot.slane %v268_v51, 2  ;;  %v401_v25 = vmul.f32 %v372_v54, %v1336_v14  ;;  %v402_v26 = vmul.f32 %v376_v55, %v1336_v14 }
 0x130   :  { %v277_v58 = vadd.f32 %v276_v53, %v275_v50  ;;  %v263_v63 = vadd.f32 %v262_v52, %v261_v49 }
 0x131   :  { %v270_v59 = vadd.f32 %v269_v56, %v268_v51  ;;  %v409_v36 = vadd.f32 %v401_v25, %v353_v27  ;;  %v410_v37 = vadd.f32 %v402_v26, %v354_v28 }
 0x132   :  { %v278_v60 = vrot.slane %v277_v58, 2  ;;  %v380_v61 = vpop.permute.xlu1 %379  ;;  %v384_v62 = vpop.permute.xlu0 %383  ;;  %v283_v7 = vmul.f32 0.0625, %v263_v63 }
 0x133   :  { %v271_v0 = vrot.slane %v270_v59, 1  ;;  %v403_v29 = vmul.f32 %v380_v61, %v1336_v14  ;;  %v404_v32 = vmul.f32 %v384_v62, %v1336_v14 }
 0x134   :  { %v279_v2 = vadd.f32 %v278_v60, %v277_v58  ;;  %v609_v18 = vsel %vm41_vm0, %v283_v7, %v282_v10 }
 0x135   :  { %v272_v3 = vadd.f32 %v271_v0, %v270_v59  ;;  %v411_v45 = vadd.f32 %v403_v29, %v355_v40  ;;  %v412_v31 = vadd.f32 %v404_v32, %v356_v41 }
 0x136   :  { %v337_v4 = vpop.permute.xlu1 %336  ;;  %v341_v5 = vpop.permute.xlu0 %340  ;;  %v280_v6 = vrot.slane %v279_v2, 1 }
 0x137   :  { %v284_v8 = vmul.f32 0.0625, %v272_v3  ;;  %v357_v44 = vmul.f32 %v337_v4, %v1339_v16  ;;  %v358_v53 = vmul.f32 %v341_v5, %v1339_v16 }
 0x138   :  { %v281_v9 = vadd.f32 %v280_v6, %v279_v2 }
 0x139   :  { %v610_v13 = vsel %vm44_vm1, %v284_v8, %v609_v18 }
 0x13a   :  { %v388_v11 = vpop.permute.xlu1 %387  ;;  %v392_v12 = vpop.permute.xlu0 %391  ;;  %v285_v17 = vmul.f32 0.0625, %v281_v9 }
 0x13b   :  { %v405_v46 = vmul.f32 %v388_v11, %v1336_v14  ;;  %v406_v47 = vmul.f32 %v392_v12, %v1336_v14 }
 0x13c   :  { %v611_v20 = vsel %vm47_vm2, %v285_v17, %v610_v13 }
 0x13d   :  { %1154 = vmatmul.mubr.msk.f32.vlgmr.msra.gmra.mxu1 %vm245_vm6, %v611_v20  ;;  %v413_v59 = vadd.f32 %v405_v46, %v357_v44  ;;  %v414_v60 = vadd.f32 %v406_v47, %v358_v53 }
 0x13e   :  { %v348_v21 = vpop.permute.xlu1 %347  ;;  %v352_v22 = vpop.permute.xlu0 %351  ;;  %1175 = vmatprep.mubr.msk.f32.mxu1 %vm1183_vm5, %v1181_v15 }
 0x13f   :  { %v359_v61 = vmul.f32 %v348_v21, %v1339_v16  ;;  %v360_v5 = vmul.f32 %v352_v22, %v1339_v16 }
 0x142   :  { %v396_v23 = vpop.permute.xlu1 %395  ;;  %v400_v24 = vpop.permute.xlu0 %399 }
 0x143   :  { %v407_v54 = vmul.f32 %v396_v23, %v1336_v14  ;;  %v408_v62 = vmul.f32 %v400_v24, %v1336_v14 }
 0x145   :  { %v415_v9 = vadd.f32 %v407_v54, %v359_v61  ;;  %v416_v12 = vadd.f32 %v408_v62, %v360_v5 }
 0x146   :  { %v420_v33 = vpop.permute.xlu1 %419  ;;  %v424_v35 = vpop.permute.xlu0 %423 }
 0x147   :  { %v449_v38 = vmul.f32 %v420_v33, %v1342_v19  ;;  %v450_v39 = vmul.f32 %v424_v35, %v1342_v19 }
 0x149   :  { %v457_v42 = vadd.f32 %v449_v38, %v409_v36  ;;  %v458_v30 = vadd.f32 %v450_v39, %v410_v37 }
 0x14a   :  { %v428_v48 = vpop.permute.xlu1 %427  ;;  %v432_v49 = vpop.permute.xlu0 %431 }
 0x14b   :  { %v465_v50 = vadd.f32 %v1357_v34, %v457_v42  ;;  %v466_v51 = vadd.f32 %v1357_v34, %v458_v30  ;;  %v451_v52 = vmul.f32 %v428_v48, %v1342_v19  ;;  %v452_v43 = vmul.f32 %v432_v49, %v1342_v19 }
 0x14d   :  { %v473_v55 = vmax.f32 %v465_v50, 0.0  ;;  %v474_v56 = vmax.f32 %v466_v51, 0.0  ;;  %v459_v57 = vadd.f32 %v451_v52, %v411_v45  ;;  %v460_v58 = vadd.f32 %v452_v43, %v412_v31 }
 0x14e   :  { %v436_v63 = vpop.permute.xlu1 %435  ;;  %v440_v0 = vpop.permute.xlu0 %439 }
 0x14f   :  { %v481_v1 = vsel %vm245_vm6, %v473_v55, 0.0  ;;  %v482_v2 = vsel %vm245_vm6, %v474_v56, 0.0  ;;  %v467_v3 = vadd.f32 %v1357_v34, %v459_v57  ;;  %v468_v4 = vadd.f32 %v1357_v34, %v460_v58 }
 0x150   :  { %v483_v6 = vadd.f32 %v482_v2, %v481_v1  ;;  %v453_v7 = vmul.f32 %v436_v63, %v1342_v19  ;;  %v454_v8 = vmul.f32 %v440_v0, %v1342_v19 }
 0x151   :  { %v475_v10 = vmax.f32 %v467_v3, 0.0  ;;  %v476_v11 = vmax.f32 %v468_v4, 0.0 }
 0x152   :  { %v484_v17 = vrot.slane %v483_v6, 4  ;;  %v461_v18 = vadd.f32 %v453_v7, %v413_v59  ;;  %v462_v13 = vadd.f32 %v454_v8, %v414_v60  ;;  %v444_v20 = vpop.permute.xlu1 %443  ;;  %v448_v21 = vpop.permute.xlu0 %447 }
 0x153   :  { %v490_v23 = vsel %vm245_vm6, %v475_v10, 0.0  ;;  %v491_v24 = vsel %vm245_vm6, %v476_v11, 0.0  ;;  %v455_v22 = vmul.f32 %v444_v20, %v1342_v19  ;;  %v456_v25 = vmul.f32 %v448_v21, %v1342_v19 }
 0x154   :  { %v485_v26 = vadd.f32 %v484_v17, %v483_v6  ;;  %v492_v27 = vadd.f32 %v491_v24, %v490_v23  ;;  %v469_v28 = vadd.f32 %v1357_v34, %v461_v18  ;;  %v470_v29 = vadd.f32 %v1357_v34, %v462_v13 }
 0x155   :  { %v463_v32 = vadd.f32 %v455_v22, %v415_v9  ;;  %v464_v33 = vadd.f32 %v456_v25, %v416_v12  ;;  %v1109_v25 = vld [vmem:[%s1538_s3 + $0x58] sm:$0xff] }
 0x156   :  { %v493_v35 = vrot.slane %v492_v27, 4  ;;  %v477_v36 = vmax.f32 %v469_v28, 0.0  ;;  %v478_v37 = vmax.f32 %v470_v29, 0.0  ;;  %v1429_v38 = vpop.permute.xlu1 %708  ;;  %v1431_v39 = vpop.permute.xlu0 %712  ;;  %v486_v42 = vrot.slane %v485_v26, 2 }
 0x157   :  { %v471_v40 = vadd.f32 %v1357_v34, %v463_v32  ;;  %v472_v41 = vadd.f32 %v1357_v34, %v464_v33  ;;  %v1107_v32 = vld [vmem:[%s1538_s3 + $0x48] sm:$0xff]  ;;  %v1106_v33 = vld [vmem:[%s1538_s3 + $0x40] sm:$0xff] }
 0x158   :  { %v494_v30 = vadd.f32 %v493_v35, %v492_v27  ;;  %v499_v45 = vsel %vm245_vm6, %v477_v36, 0.0  ;;  %v500_v31 = vsel %vm245_vm6, %v478_v37, 0.0  ;;  %v487_v53 = vadd.f32 %v486_v42, %v485_v26  ;;  %v1108_v27 = vld [vmem:[%s1538_s3 + $0x50] sm:$0xff] }
 0x159   :  { %v501_v46 = vadd.f32 %v500_v31, %v499_v45  ;;  %v479_v47 = vmax.f32 %v471_v40, 0.0  ;;  %v480_v48 = vmax.f32 %v472_v41, 0.0  ;;  %v747_v41 = vmul.f32 %v1429_v38, %v1339_v16 }
 0x15a   :  { %v495_v49 = vrot.slane %v494_v30, 2  ;;  %v1437_v50 = vpop.permute.xlu1 %719  ;;  %v1439_v51 = vpop.permute.xlu0 %723  ;;  %v488_v62 = vrot.slane %v487_v53, 1  ;;  %v748_v42 = vmul.f32 %v1431_v39, %v1339_v16 }
 0x15b   :  { %v502_v52 = vrot.slane %v501_v46, 4  ;;  %v508_v43 = vsel %vm245_vm6, %v479_v47, 0.0  ;;  %v509_v44 = vsel %vm245_vm6, %v480_v48, 0.0  ;;  %v750_v38 = vmul.f32 %v1439_v51, %v1339_v16 }
 0x15c   :  { %v496_v54 = vadd.f32 %v495_v49, %v494_v30  ;;  %v510_v55 = vadd.f32 %v509_v44, %v508_v43  ;;  %v489_v6 = vadd.f32 %v488_v62, %v487_v53  ;;  %v749_v43 = vmul.f32 %v1437_v50, %v1339_v16 }
 0x15d   :  { %v503_v56 = vadd.f32 %v502_v52, %v501_v46 }
 0x15e   :  { %v497_v57 = vrot.slane %v496_v54, 1  ;;  %v511_v58 = vrot.slane %v510_v55, 4  ;;  %v766_v59 = vpop.permute.xlu1 %765  ;;  %v770_v60 = vpop.permute.xlu0 %769  ;;  %v517_v13 = vmul.f32 0.0625, %v489_v6 }
 0x15f   :  { %v504_v61 = vrot.slane %v503_v56, 2  ;;  %v795_v37 = vmul.f32 %v766_v59, %v1336_v14  ;;  %v796_v40 = vmul.f32 %v770_v60, %v1336_v14 }
 0x160   :  { %v512_v63 = vadd.f32 %v511_v58, %v510_v55  ;;  %v498_v4 = vadd.f32 %v497_v57, %v496_v54 }
 0x161   :  { %v505_v0 = vadd.f32 %v504_v61, %v503_v56  ;;  %v803_v47 = vadd.f32 %v795_v37, %v747_v41  ;;  %v804_v48 = vadd.f32 %v796_v40, %v748_v42 }
 0x162   :  { %v513_v1 = vrot.slane %v512_v63, 2  ;;  %v774_v2 = vpop.permute.xlu1 %773  ;;  %v778_v3 = vpop.permute.xlu0 %777  ;;  %v518_v12 = vmul.f32 0.0625, %v498_v4 }
 0x163   :  { %v506_v5 = vrot.slane %v505_v0, 1  ;;  %v797_v30 = vmul.f32 %v774_v2, %v1336_v14  ;;  %v798_v45 = vmul.f32 %v778_v3, %v1336_v14 }
 0x164   :  { %v514_v7 = vadd.f32 %v513_v1, %v512_v63  ;;  %v530_v24 = vsel %vm41_vm0, %v518_v12, %v517_v13 }
 0x165   :  { %v507_v8 = vadd.f32 %v506_v5, %v505_v0  ;;  %v805_v53 = vadd.f32 %v797_v30, %v749_v43  ;;  %v806_v54 = vadd.f32 %v798_v45, %v750_v38 }
 0x166   :  { %v731_v9 = vpop.permute.xlu1 %730  ;;  %v735_v10 = vpop.permute.xlu0 %734  ;;  %v515_v11 = vrot.slane %v514_v7, 1 }
 0x167   :  { %v519_v17 = vmul.f32 0.0625, %v507_v8  ;;  %v751_v51 = vmul.f32 %v731_v9, %v1339_v16  ;;  %v752_v62 = vmul.f32 %v735_v10, %v1339_v16 }
 0x168   :  { %v516_v18 = vadd.f32 %v515_v11, %v514_v7 }
 0x169   :  { %v531_v22 = vsel %vm44_vm1, %v519_v17, %v530_v24 }
 0x16a   :  { %v782_v20 = vpop.permute.xlu1 %781  ;;  %v786_v21 = vpop.permute.xlu0 %785  ;;  %v520_v23 = vmul.f32 0.0625, %v516_v18 }
 0x16b   :  { %v799_v55 = vmul.f32 %v782_v20, %v1336_v14  ;;  %v800_v56 = vmul.f32 %v786_v21, %v1336_v14 }
 0x16c   :  { %v532_v26 = vsel %vm47_vm2, %v520_v23, %v531_v22 }
 0x16d   :  { %1143 = vmatmul.mubr.msk.f32.vlgmr.msra.gmra.mxu0 %vm245_vm6, %v532_v26  ;;  %v807_v4 = vadd.f32 %v799_v55, %v751_v51  ;;  %v808_v5 = vadd.f32 %v800_v56, %v752_v62 }
 0x16e   :  { %v742_v28 = vpop.permute.xlu1 %741  ;;  %v746_v29 = vpop.permute.xlu0 %745  ;;  %1157 = vmatpush3.msra.mxu0 %v1109_v25  ;;  %1164 = vmatprep.mubr.msk.f32.mxu0 %vm1183_vm5, %v1181_v15 }
 0x16f   :  { %1158 = vmatprep.subr.mxu0 %v1181_v15  ;;  %v753_v6 = vmul.f32 %v742_v28, %v1339_v16  ;;  %v754_v18 = vmul.f32 %v746_v29, %v1339_v16 }
 0x170   :  { %1159 = vmatpush3.msra.mxu0 %v1108_v27 }
 0x171   :  { %1160 = vmatprep.subr.mxu0 %v1181_v15 }
 0x172   :  { %v790_v35 = vpop.permute.xlu1 %789  ;;  %v794_v36 = vpop.permute.xlu0 %793  ;;  %1161 = vmatpush3.msra.mxu0 %v1107_v32 }
 0x173   :  { %1162 = vmatprep.subr.mxu0 %v1181_v15  ;;  %v801_v63 = vmul.f32 %v790_v35, %v1336_v14  ;;  %v802_v7 = vmul.f32 %v794_v36, %v1336_v14 }
 0x174   :  { %1163 = vmatpush3.msra.mxu0 %v1106_v33 }
 0x175   :  { %v809_v23 = vadd.f32 %v801_v63, %v753_v6  ;;  %v810_v22 = vadd.f32 %v802_v7, %v754_v18 }
 0x176   :  { %v814_v31 = vpop.permute.xlu1 %813  ;;  %v818_v46 = vpop.permute.xlu0 %817 }
 0x177   :  { %v843_v49 = vmul.f32 %v814_v31, %v1342_v19  ;;  %v844_v52 = vmul.f32 %v818_v46, %v1342_v19 }
 0x179   :  { %v851_v44 = vadd.f32 %v843_v49, %v803_v47  ;;  %v852_v39 = vadd.f32 %v844_v52, %v804_v48 }
 0x17a   :  { %v822_v57 = vpop.permute.xlu1 %821  ;;  %v826_v58 = vpop.permute.xlu0 %825 }
 0x17b   :  { %v859_v59 = vadd.f32 %v1357_v34, %v851_v44  ;;  %v860_v60 = vadd.f32 %v1357_v34, %v852_v39  ;;  %v845_v61 = vmul.f32 %v822_v57, %v1342_v19  ;;  %v846_v50 = vmul.f32 %v826_v58, %v1342_v19 }
 0x17d   :  { %v867_v0 = vmax.f32 %v859_v59, 0.0  ;;  %v868_v1 = vmax.f32 %v860_v60, 0.0  ;;  %v853_v2 = vadd.f32 %v845_v61, %v805_v53  ;;  %v854_v3 = vadd.f32 %v846_v50, %v806_v54 }
 0x17e   :  { %v830_v8 = vpop.permute.xlu1 %829  ;;  %v834_v11 = vpop.permute.xlu0 %833 }
 0x17f   :  { %v875_v12 = vsel %vm245_vm6, %v867_v0, 0.0  ;;  %v876_v9 = vsel %vm245_vm6, %v868_v1, 0.0  ;;  %v861_v10 = vadd.f32 %v1357_v34, %v853_v2  ;;  %v862_v17 = vadd.f32 %v1357_v34, %v854_v3 }
 0x180   :  { %v877_v13 = vadd.f32 %v876_v9, %v875_v12  ;;  %v847_v20 = vmul.f32 %v830_v8, %v1342_v19  ;;  %v848_v21 = vmul.f32 %v834_v11, %v1342_v19 }
 0x181   :  { %v869_v24 = vmax.f32 %v861_v10, 0.0  ;;  %v870_v14 = vmax.f32 %v862_v17, 0.0 }
 0x182   :  { %v878_v25 = vrot.slane %v877_v13, 4  ;;  %v855_v26 = vadd.f32 %v847_v20, %v807_v4  ;;  %v856_v27 = vadd.f32 %v848_v21, %v808_v5  ;;  %v838_v28 = vpop.permute.xlu1 %837  ;;  %v842_v32 = vpop.permute.xlu0 %841  ;;  %v1011_v20 = vld [vmem:[%s1541_s5 + $0x10] sm:$0xff]  ;;  %v1010_v21 = vld [vmem:[%s1541_s5 + $0x8] sm:$0xff] }
 0x183   :  { %v884_v33 = vsel %vm245_vm6, %v869_v24, 0.0  ;;  %v885_v35 = vsel %vm245_vm6, %v870_v14, 0.0  ;;  %v849_v16 = vmul.f32 %v838_v28, %v1342_v19  ;;  %v850_v29 = vmul.f32 %v842_v32, %v1342_v19  ;;  %v1111_v32 = vld [vmem:[%s1543_s4] ss:$0 sm:$0xff] }
 0x184   :  { %v879_v36 = vadd.f32 %v878_v25, %v877_v13  ;;  %v886_v37 = vadd.f32 %v885_v35, %v884_v33  ;;  %v863_v40 = vadd.f32 %v1357_v34, %v855_v26  ;;  %v864_v41 = vadd.f32 %v1357_v34, %v856_v27  ;;  %v1012_v13 = vld [vmem:[%s1541_s5 + $0x18] sm:$0xff] }
 0x185   :  { %v857_v42 = vadd.f32 %v849_v16, %v809_v23  ;;  %v858_v30 = vadd.f32 %v850_v29, %v810_v22  ;;  %1168 = vmatpush3.msra.mxu1 %v1012_v13  ;;  %v1009_v23 = vld [vmem:[%s1541_s5] sm:$0xff]  ;;  %v12_v24 = vstv %s1542_s6 }
 0x186   :  { %v887_v45 = vrot.slane %v886_v37, 4  ;;  %v871_v31 = vmax.f32 %v863_v40, 0.0  ;;  %v872_v46 = vmax.f32 %v864_v41, 0.0  ;;  %v880_v49 = vrot.slane %v879_v36, 2  ;;  %1169 = vmatprep.subr.mxu1 %v1181_v15  ;;  %13 = vst [vmem:[#allocation3] sm:$0x1] %v12_v24 }
 0x187   :  { %v865_v47 = vadd.f32 %v1357_v34, %v857_v42  ;;  %v866_v48 = vadd.f32 %v1357_v34, %v858_v30  ;;  %1170 = vmatpush3.msra.mxu1 %v1011_v20 }
 0x188   :  { %v888_v52 = vadd.f32 %v887_v45, %v886_v37  ;;  %v893_v43 = vsel %vm245_vm6, %v871_v31, 0.0  ;;  %v894_v19 = vsel %vm245_vm6, %v872_v46, 0.0  ;;  %v881_v57 = vadd.f32 %v880_v49, %v879_v36  ;;  %1171 = vmatprep.subr.mxu1 %v1181_v15 }
 0x189   :  { %v895_v38 = vadd.f32 %v894_v19, %v893_v43  ;;  %v873_v44 = vmax.f32 %v865_v47, 0.0  ;;  %v874_v39 = vmax.f32 %v866_v48, 0.0  ;;  %1172 = vmatpush3.msra.mxu1 %v1010_v21 }
 0x18a   :  { %v889_v53 = vrot.slane %v888_v52, 2  ;;  %v882_v51 = vrot.slane %v881_v57, 1  ;;  %1173 = vmatprep.subr.mxu1 %v1181_v15 }
 0x18b   :  { %v896_v54 = vrot.slane %v895_v38, 4  ;;  %v902_v55 = vsel %vm245_vm6, %v873_v44, 0.0  ;;  %v903_v56 = vsel %vm245_vm6, %v874_v39, 0.0  ;;  %1174 = vmatpush3.msra.mxu1 %v1009_v23 }
 0x18c   :  { %v890_v58 = vadd.f32 %v889_v53, %v888_v52  ;;  %v904_v59 = vadd.f32 %v903_v56, %v902_v55  ;;  %v883_v3 = vadd.f32 %v882_v51, %v881_v57 }
 0x18d   :  { %v897_v60 = vadd.f32 %v896_v54, %v895_v38  ;;  %v1112_v29 = vld [vmem:[#allocation3] ss:$0 sm:$0xff] }
 0x18e   :  { %v891_v34 = vrot.slane %v890_v58, 1  ;;  %v905_v61 = vrot.slane %v904_v59, 4  ;;  %v911_v11 = vmul.f32 0.0625, %v883_v3 }
 0x18f   :  { %v898_v50 = vrot.slane %v897_v60, 2 }
 0x190   :  { %v906_v62 = vadd.f32 %v905_v61, %v904_v59  ;;  %v892_v0 = vadd.f32 %v891_v34, %v890_v58 }
 0x191   :  { %v899_v63 = vadd.f32 %v898_v50, %v897_v60 }
 0x192   :  { %v907_v1 = vrot.slane %v906_v62, 2  ;;  %v912_v6 = vmul.f32 0.0625, %v892_v0 }
 0x193   :  { %v900_v2 = vrot.slane %v899_v63, 1 }
 0x194   :  { %v908_v4 = vadd.f32 %v907_v1, %v906_v62  ;;  %v924_v10 = vsel %vm41_vm0, %v912_v6, %v911_v11 }
 0x195   :  { %v901_v5 = vadd.f32 %v900_v2, %v899_v63 }
 0x196   :  { %v909_v7 = vrot.slane %v908_v4, 1 }
 0x197   :  { %v913_v8 = vmul.f32 0.0625, %v901_v5 }
 0x198   :  { %v910_v12 = vadd.f32 %v909_v7, %v908_v4 }
 0x199   :  { %v925_v17 = vsel %vm44_vm1, %v913_v8, %v924_v10 }
 0x19a   :  { %v914_v9 = vmul.f32 0.0625, %v910_v12 }
 0x19c   :  { %v926_v18 = vsel %vm47_vm2, %v914_v9, %v925_v17 }
 0x19d   :  { %1165 = vmatmul.mubr.msk.f32.vlgmr.msra.gmra.mxu0 %vm245_vm6, %v926_v18 }
 0x1fd   :  { %v680_v14 = vpop.f32.mrf.mxu1 }
 0x1ff   :  { %v1155_v22 = vpop.f32.mrf.mxu1 }
 0x22d   :  { %v601_v25 = vpop.f32.mrf.mxu0 }
 0x22e   :  { %v681_v27 = vadd.f32 %v680_v14, %v601_v25 }
 0x22f   :  { %v1144_v26 = vpop.f32.mrf.mxu0 }
 0x25d   :  { %v995_v28 = vpop.f32.mrf.mxu0 }
 0x25e   :  { %v999_v33 = vadd.f32 %v995_v28, %v681_v27 }
 0x25f   :  { %v1166_v35 = vpop.f32.mrf.mxu0 }
 0x260   :  { %v1007_v16 = vadd.f32 %v1111_v32, %v999_v33 }
 0x262   :  { %v1008_v15 = vmax.f32 %v1007_v16, 0.0 }
 0x264   :  { %1176 = vmatmul.mubr.msk.f32.vlgmr.msra.gmra.mxu1 %vm245_vm6, %v1008_v15 }
 0x324   :  { %v1089_v36 = vpop.f32.mrf.mxu1 }
 0x325   :  { %v1090_v37 = vadd.f32 %v1112_v29, %v1089_v36 }
 0x326   :  { %v1177_v40 = vpop.f32.mrf.mxu1 }
 0x327   :  { %1094 = vst.msk [vmem:[%s1544_s7] sm:$0xf] %vm1093_vm7, %v1090_v37 }

</bundles_post_ra>
